<compile_context>
chip_gen: v7x
topology: tpu7x:2x2x1
jax: 0.10.0
libtpu: 0.0.40
codegen_flags: <defaults>
</compile_context>

<pallas_src>
import math

import numpy as np

import jax
import jax.numpy as jnp
from jax.experimental import pallas as pl
from jax.experimental.pallas import tpu as pltpu


def _round_up(v, m):
    return ((v + m - 1) // m) * m


def _pick_tile_n(N, C, itemsize, requested=None, *, min_split=512):
    """Row-tile size for the score kernel.

    - auto target ~2 MiB per x tile (HBM roofline needs >= ~1 MiB tiles)
    - multiple of 128 so the (1, tile_n) deg/score blocks stay lane-dense
    - >= 2 tiles whenever there is enough work (megacore: 2 TCs on v7x)
    - a single full-dim tile for small inputs (block == array dims is always
      a legal block shape)
    """
    if requested is None:
        requested = max(512, min(4096, (2 << 20) // max(1, C * itemsize)))
    if N <= min_split:
        return N
    if N <= requested:
        requested = pl.cdiv(N, 2)          # give the parallel axis >=2 tiles
    tile = _round_up(min(requested, N), 128)
    return N if tile >= N else tile


def _block_vmem_bytes(rows, cols, itemsize):
    # VMEM footprint of one (rows, cols) block after (8, 128) tile padding.
    return _round_up(max(rows, 1), 8) * _round_up(max(cols, 1), 128) * itemsize


def _vmem_limit_bytes(need_bytes):
    try:
        cap = int(pltpu.get_tpu_info().vmem_capacity_bytes)
    except Exception:  # interpret mode / older jax: assume v7x (smallest) VMEM
        cap = 64 * 1024 * 1024
    limit = min(3 * cap // 4, max(16 * 1024 * 1024, need_bytes + (8 << 20)))
    return int(max(limit, need_bytes))


# ---------------------------------------------------------------------------
# score kernel:  score = tanh(beta[0] * (x @ p) + beta[1] * deg)
# ---------------------------------------------------------------------------
def _pan_score_kernel(x_ref, deg_ref, p_ref, beta_ref, score_ref):
    # (1, C) x (tile_n, C)^T -> (1, tile_n) on the MXU (same contraction
    # pattern as q @ k^T in attention).  The channel reduction runs on the
    # systolic array and the result lands lane-dense, so the scale / add /
    # tanh / store below run on tile_n/1024 vregs (8 EUP pushes for the tanh)
    # instead of tile_n/8 masked column vregs.
    s1 = jax.lax.dot_general(
        p_ref[...], x_ref[...],
        dimension_numbers=(((1,), (1,)), ((), ())),
        preferred_element_type=jnp.float32)                     # (1, tile_n)
    score_ref[...] = jnp.tanh(beta_ref[0] * s1 + beta_ref[1] * deg_ref[...])


def pan_score(x, deg, p, beta, *, tile_n=None, input_dtype=jnp.bfloat16):
    """score_i = tanh(beta0 * <x_i, p> + beta1 * deg_i), row-tiled on TPU.

    input_dtype: dtype of the x / p HBM reads and the MXU operands (default
      bf16 halves the dominant HBM read; accumulation stays f32).  Pass None
      to keep x's own dtype (MXU default precision).
    """
    N, C = x.shape
    compute_dtype = (np.dtype(input_dtype) if input_dtype is not None
                     else np.dtype(x.dtype))
    if x.dtype != compute_dtype:
        x = x.astype(compute_dtype)
    p = p.reshape(1, C).astype(compute_dtype)
    beta = beta.astype(jnp.float32)

    itemsize = compute_dtype.itemsize
    tn = _pick_tile_n(N, C, itemsize, tile_n)
    num_tiles = pl.cdiv(N, tn)
    n_pad = num_tiles * tn

    # Only the tiny per-node degree vector is padded; x itself is NOT padded
    # (no extra HBM copy of the (N, C) slab).  The ragged final x block is
    # masked by Pallas and the garbage scores for rows >= N are sliced off
    # below, so padded rows never reach top_k.
    deg = deg.reshape(-1).astype(jnp.float32)
    if n_pad != N:
        deg = jnp.pad(deg, (0, n_pad - N))
    deg = deg.reshape(1, n_pad)

    need = 2 * (_block_vmem_bytes(tn, C, itemsize)       # x tile (dominant)
                + 2 * _block_vmem_bytes(1, tn, 4)        # deg + score blocks
                + _block_vmem_bytes(1, C, itemsize))     # p

    score = pl.pallas_call(
        _pan_score_kernel,
        out_shape=jax.ShapeDtypeStruct((1, n_pad), jnp.float32),
        grid=(num_tiles,),
        in_specs=[
            pl.BlockSpec((tn, C), lambda i: (i, 0)),            # x row tile
            pl.BlockSpec((1, tn), lambda i: (0, i)),            # deg, lane-dense
            pl.BlockSpec((1, C), lambda i: (0, 0)),             # p (replicated)
            pl.BlockSpec(memory_space=pltpu.MemorySpace.SMEM),  # beta scalars
        ],
        out_specs=pl.BlockSpec((1, tn), lambda i: (0, i)),      # lane-dense
        compiler_params=pltpu.CompilerParams(
            dimension_semantics=("parallel",),                  # megacore on v7x
            vmem_limit_bytes=_vmem_limit_bytes(need)),
    )(x, deg, p, beta)
    return score.reshape(-1)[:N]


# ---------------------------------------------------------------------------
# full forward (single graph, batch = zeros, min_score = None)
# ---------------------------------------------------------------------------
def pan_pooling_forward(x, row, col, edge_weight, p, beta,
                        ratio=0.5, multiplier=1.0, *,
                        score_tile_n=None, score_input_dtype=jnp.bfloat16):
    N, C = x.shape

    # deg(M) = scatter_add(edge_weight, col): O(E), never a dense (N, N) MET.
    deg = jax.ops.segment_sum(edge_weight.astype(jnp.float32), col,
                              num_segments=N)

    score = pan_score(x, deg, p, beta, tile_n=score_tile_n,
                      input_dtype=score_input_dtype)            # (N,), tanh'd

    # topk with batch = all-zeros (single graph): k = ceil(ratio * N)
    k = int(math.ceil(ratio * N))
    score_perm, perm = jax.lax.top_k(score, k)                  # (k,), (k,)

    # Pooled features: x[perm] * score[perm] * multiplier.  Left to XLA,
    # which fuses the row gather and the broadcast multiply into a single
    # pass over the (k, C) slab; a separate Pallas scale kernel would re-read
    # and re-write that slab (an extra HBM pass).  multiplier is folded into
    # the (k,) score column as a traced value (no recompile when it changes).
    # TODO(synk): a fused Pallas gather-scale would need manual per-row DMA
    # (BlockSpec cannot express a multi-row gather per grid step).
    scale = (score_perm * jnp.float32(multiplier)).astype(x.dtype)
    x_out = x[perm] * scale[:, None]

    batch = jnp.zeros((N,), jnp.int32)

    # filter_adj on edge_index = stack([col, row]): keep edges whose endpoints
    # both survive pooling and relabel to the pooled index space.
    node_map = jnp.full((N,), -1, jnp.int32).at[perm].set(
        jnp.arange(k, dtype=jnp.int32))
    new_r = node_map[col]
    new_c = node_map[row]
    keep = (new_r >= 0) & (new_c >= 0)
    # TODO(synk): PyTorch compacts the edge list to exactly the kept edges;
    # dynamic-size outputs aren't expressible here, so dropped edges stay in
    # place masked with index -1 / weight 0.
    edge_index = jnp.where(keep[None, :], jnp.stack([new_r, new_c]), -1)
    edge_weight_out = jnp.where(keep, edge_weight, jnp.float32(0.0))

    return x_out, edge_index, edge_weight_out, batch[perm], perm, score_perm


def _reference_score(x, col, edge_weight, p, beta):
    deg = jax.ops.segment_sum(edge_weight, col, num_segments=x.shape[0])
    return jnp.tanh(beta[0] * (x * p).sum(-1) + beta[1] * deg)


if __name__ == "__main__":
    def make_inputs(key, N, C, E):
        kx, kr, kc, kw = jax.random.split(key, 4)
        x = jax.random.normal(kx, (N, C), dtype=jnp.float32)
        # Pre-quantize x to bf16 values so the bf16-DMA kernel path and the
        # f32 reference see identical inputs (keeps correctness checks tight).
        x = x.astype(jnp.bfloat16).astype(jnp.float32)
        row = jax.random.randint(kr, (E,), 0, N, dtype=jnp.int32)
        col = jax.random.randint(kc, (E,), 0, N, dtype=jnp.int32)
        w = jax.random.uniform(kw, (E,), dtype=jnp.float32)
        return x, row, col, w

    # PANPooling.reset_parameters(): p = 1, beta = 0.5
    ratio = 0.5
    beta = jnp.full((2,), 0.5, jnp.float32)

    # --- small smoke test (N=64, C=16): single full-dim tile ----------------
    N, C, E = 64, 16, 256
    x, row, col, w = make_inputs(jax.random.PRNGKey(0), N, C, E)
    p = jnp.ones((C,), jnp.float32)
    outs = pan_pooling_forward(x, row, col, w, p, beta, ratio=ratio,
                               multiplier=1.0)
    outs = jax.block_until_ready(outs)
    x_out, edge_index, ew_out, batch_perm, perm, score_perm = outs
    k = int(math.ceil(ratio * N))
    assert x_out.shape == (k, C) and edge_index.shape == (2, E)
    assert bool(jnp.all(jnp.isfinite(x_out)))

    deg = jax.ops.segment_sum(w, col, num_segments=N)
    ref_score = _reference_score(x, col, w, p, beta)
    s_bf16 = pan_score(x, deg, p, beta)                      # default bf16 DMA
    s_f32 = pan_score(x, deg, p, beta, input_dtype=None)     # f32 DMA, DEFAULT
    assert bool(jnp.allclose(s_bf16, ref_score, rtol=1e-4, atol=1e-4))
    assert bool(jnp.allclose(s_f32, ref_score, rtol=1e-4, atol=1e-4))
    assert bool(jnp.allclose(x_out, x[perm] * score_perm[:, None],
                             rtol=1e-6, atol=1e-6))

    # --- larger test (N=1000, C=128): 2 row tiles of 512 (parallel axis),
    # ragged final x block (rows 1000..1023 masked, sliced off before top_k),
    # bf16 input DMA, multiplier folded into the score column.
    N2, C2, E2 = 1000, 128, 4096
    x2, row2, col2, w2 = make_inputs(jax.random.PRNGKey(1), N2, C2, E2)
    p2 = jnp.ones((C2,), jnp.float32)
    outs2 = pan_pooling_forward(x2, row2, col2, w2, p2, beta, ratio=ratio,
                                multiplier=2.0)
    outs2 = jax.block_until_ready(outs2)
    x2_out, ei2, ew2, b2, perm2, sp2 = outs2
    k2 = int(math.ceil(ratio * N2))
    assert x2_out.shape == (k2, C2)
    assert bool(jnp.all(jnp.isfinite(x2_out)))
    assert int(jnp.max(perm2)) < N2

    deg2 = jax.ops.segment_sum(w2, col2, num_segments=N2)
    ref2 = _reference_score(x2, col2, w2, p2, beta)
    ker2 = pan_score(x2, deg2, p2, beta)
    assert ker2.shape == (N2,)
    assert bool(jnp.allclose(ker2, ref2, rtol=1e-4, atol=1e-4))
    expect2 = x2[perm2] * (sp2 * 2.0)[:, None]
    assert bool(jnp.allclose(x2_out, expect2, rtol=1e-5, atol=1e-5))

    print("KERNEL_OK")
</pallas_src>

<mosaic_0001>
module attributes {stable_mosaic.version = 11 : i64} {
  func.func @_pan_score_kernel(%arg0: i32, %arg1: memref<64x16xbf16, #tpu.memory_space<vmem>>, %arg2: memref<1x64xf32, #tpu.memory_space<vmem>>, %arg3: memref<1x16xbf16, #tpu.memory_space<vmem>>, %arg4: memref<2xf32, #tpu.memory_space<smem>>, %arg5: memref<1x64xf32, #tpu.memory_space<vmem>>) attributes {dimension_semantics = [#tpu.dimension_semantics<parallel>], iteration_bounds = array<i64: 1>, scalar_prefetch = 0 : i64, scratch_operands = 0 : i64, tpu.core_type = #tpu.core_type<tc>, window_params = [{transform_indices = @transform_0, window_bounds = array<i64: 64, 16>}, {transform_indices = @transform_1, window_bounds = array<i64: 1, 64>}, {pipeline_mode = #tpu.pipeline_mode<synchronous>, transform_indices = @transform_2, window_bounds = array<i64: 1, 16>}, {transform_indices = @transform_3, window_bounds = array<i64: 2>}, {transform_indices = @transform_4, window_bounds = array<i64: 1, 64>}]} {
    %c0 = arith.constant 0 : index
    %c0_0 = arith.constant 0 : index
    %0 = vector.load %arg3[%c0, %c0_0] : memref<1x16xbf16, #tpu.memory_space<vmem>>, vector<1x16xbf16>
    %c0_1 = arith.constant 0 : index
    %c0_2 = arith.constant 0 : index
    %1 = vector.load %arg1[%c0_1, %c0_2] : memref<64x16xbf16, #tpu.memory_space<vmem>>, vector<64x16xbf16>
    %cst = arith.constant dense<0.000000e+00> : vector<1x64xf32>
    %2 = tpu.matmul %0, %1, %cst {dimension_numbers = #tpu.dot_dimension_numbers<[1], [1], [0], [0], [0, 0, 1, 0], [], []>} : vector<1x16xbf16>, vector<64x16xbf16>, vector<1x64xf32> -> vector<1x64xf32>
    %c0_3 = arith.constant 0 : index
    %3 = memref.load %arg4[%c0_3] : memref<2xf32, #tpu.memory_space<smem>>
    %4 = vector.broadcast %3 : f32 to vector<1x64xf32>
    %5 = arith.mulf %4, %2 : vector<1x64xf32>
    %c1 = arith.constant 1 : index
    %6 = memref.load %arg4[%c1] : memref<2xf32, #tpu.memory_space<smem>>
    %c0_4 = arith.constant 0 : index
    %c0_5 = arith.constant 0 : index
    %7 = vector.load %arg2[%c0_4, %c0_5] : memref<1x64xf32, #tpu.memory_space<vmem>>, vector<1x64xf32>
    %8 = vector.broadcast %6 : f32 to vector<1x64xf32>
    %9 = arith.mulf %8, %7 : vector<1x64xf32>
    %10 = arith.addf %5, %9 : vector<1x64xf32>
    %11 = math.tanh %10 : vector<1x64xf32>
    %c0_6 = arith.constant 0 : index
    %c0_7 = arith.constant 0 : index
    %12 = vector.load %arg5[%c0_6, %c0_7] : memref<1x64xf32, #tpu.memory_space<vmem>>, vector<1x64xf32>
    tpu.vector_store %arg5[%c0_6, %c0_7], %11 {strides = array<i32>} : memref<1x64xf32, #tpu.memory_space<vmem>>, vector<1x64xf32>,
    return
  }
  func.func @transform_0(%arg0: i32) -> (i32, i32) {
    %c0_i32 = arith.constant 0 : i32
    %c0_i32_0 = arith.constant 0 : i32
    return %arg0, %c0_i32 : i32, i32
  }
  func.func @transform_1(%arg0: i32) -> (i32, i32) {
    %c0_i32 = arith.constant 0 : i32
    %c0_i32_0 = arith.constant 0 : i32
    return %c0_i32, %arg0 : i32, i32
  }
  func.func @transform_2(%arg0: i32) -> (i32, i32) {
    %c0_i32 = arith.constant 0 : i32
    %c0_i32_0 = arith.constant 0 : i32
    %c0_i32_1 = arith.constant 0 : i32
    return %c0_i32, %c0_i32_0 : i32, i32
  }
  func.func @transform_3(%arg0: i32) -> i32 {
    %c0_i32 = arith.constant 0 : i32
    %c0_i32_0 = arith.constant 0 : i32
    return %c0_i32 : i32
  }
  func.func @transform_4(%arg0: i32) -> (i32, i32) {
    %c0_i32 = arith.constant 0 : i32
    %c0_i32_0 = arith.constant 0 : i32
    return %c0_i32, %arg0 : i32, i32
  }
}

</mosaic_0001>

<bundles_post_ra>
// kernel: tpu_custom_call.1
= control target key start
LH: loop header
LB: loop body
LE: loop exit
PB: predicated region body
PF: predicated region fallthrough
CT: control target
= control target key end

     0   :  { %9 = vsyncpa [#allocation4], 0  ;;  %s281_s0 = inlined_call_operand.vmem [shape: bf16[64,16], index: 0, kind: input, shape index: {}]   ;;  %s282_s1 = inlined_call_operand.vmem [shape: f32[1,64], index: 1, kind: input, shape index: {}]   ;;  %s283_s2 = inlined_call_operand.vmem [shape: bf16[1,16], index: 2, kind: input, shape index: {}]   ;;  %s284_s3 = inlined_call_operand.vmem [shape: f32[2], index: 3, kind: input, shape index: {}]   ;;  %s285_s4 = inlined_call_operand.hbm [shape: f32[1,64], index: 4, kind: output, shape index: {}]  }
   0x1   :  { %10 = vsyncpa [#allocation3], 0  ;;  %s23_s17 = sshll.u32 %s284_s3, 4  ;;  %s24_s17 = int_to_ptr.vmem [resolvable:$true] %s23_s17 }
   0x2   :  { %s176_s18 = scalar_lea.vmem %s24_s17, 16  ;;  %p181_p1 = scmp.lt.s32.totalorder %s24_s17, %s24_s17 }
   0x3   :  { %p177_p0 = scmp.ne.s32.totalorder %s24_s17, %s176_s18  ;;  %p182_p2 = scmp.lt.s32.totalorder %s176_s18, %s176_s18 }
   0x5   :  { %p183_p3 = por %p182_p2, %p181_p1 }
   0x7   :  { %p184_p4 = pnand %p183_p3, %p177_p0 }
   0x9   :  { %187 = shalt.err (!%p184_p4)
}
   0xa   :  { %s214_s19 = smov [#allocation2]  }
   0xb   :  { %26 = dma.vmem_to_smem %s24_s17, 16, %s214_s19, [#allocation4]  }
   0xc   :  { %210 = dma.done.wait [#allocation4], 16  }
   0xd   :  { %211 = vsyncadd [#allocation4], 4294967280 }
   0xe   :  { %30 = sfence }
   0xf   :  { %v170_v0 = vld [vmem:[%s281_s0] sm:$0xff]   ;;  %v215_v1 = vmov 0.0   ;;  %vm61_vm0 = vcmask 130048   ;;  %v171_v3 = vld [vmem:[%s281_s0 + $0x8] sm:$0xff]   ;;  %vm216_vm1 = vmmov 0   ;;  %v172_v5 = vld [vmem:[%s281_s0 + $0x10] sm:$0xff]  }
  0x10   :  { %154 = vmatprep.subr.bf16.mxu0 %v215_v1  ;;  %v66_v2 = vsel %vm61_vm0, %v170_v0, 0  ;;  %162 = vmatprep.mubr.msk.bf16.mxu0 %vm216_vm1, %v215_v1  ;;  %v69_v4 = vsel %vm61_vm0, %v171_v3, 0  ;;  %v72_v6 = vsel %vm61_vm0, %v172_v5, 0  ;;  %v173_v7 = vld [vmem:[%s281_s0 + $0x18] sm:$0xff]   ;;  %v32_v9 = vld [vmem:[%s283_s2] sm:$0x1] }
  0x11   :  { %155 = vmatpush3.bf16.xpose.msra.mxu0 %v66_v2  ;;  %v75_v8 = vsel %vm61_vm0, %v173_v7, 0  ;;  %s148_s29 = sld [smem:[#allocation2 + $0x1]]  ;;  %s117_s30 = sld [smem:[#allocation2]]  ;;  %v121_v10 = vld [vmem:[%s282_s1] sm:$0x1]  ;;  %vm126_vm2 = vcmask 516096  }
  0x12   :  { %156 = vmatprep.subr.bf16.mxu0 %v215_v1  ;;  %s217_s0 = smov [#allocation5]  }
  0x13   :  { %s134_s2 = sshll.u32 %s217_s0, 4  ;;  %s135_s2 = int_to_ptr.vmem [resolvable:$true] %s134_s2 }
  0x14   :  { %s188_s7 = scalar_lea.vmem %s135_s2, 16  ;;  %s192_s8 = scalar_lea.vmem %s135_s2, 32 }
  0x15   :  { %p189_p5 = scmp.ne.s32.totalorder %s135_s2, %s188_s7  ;;  %p193_p6 = scmp.lt.s32.totalorder %s135_s2, %s135_s2 }
  0x16   :  { %p194_p7 = scmp.lt.s32.totalorder %s192_s8, %s188_s7 }
  0x17   :  { %v122_v11 = vstv %s148_s29  ;;  %v118_v12 = vstv %s117_s30 }
  0x18   :  { %v123_v13 = vmul.f32 %v122_v11, %v121_v10  ;;  %p195_p8 = por %p194_p7, %p193_p6 }
  0x19   :  { %157 = vmatpush3.bf16.xpose.msra.mxu0 %v69_v4 }
  0x1a   :  { %158 = vmatprep.subr.bf16.mxu0 %v215_v1  ;;  %p196_p9 = pnand %p195_p8, %p189_p5 }
  0x21   :  { %159 = vmatpush3.bf16.xpose.msra.mxu0 %v72_v6 }
  0x22   :  { %160 = vmatprep.subr.bf16.mxu0 %v215_v1 }
  0x29   :  { %161 = vmatpush3.bf16.xpose.msra.mxu0 %v75_v8 }
  0x30   :  { %163 = vmatmul.mubr.msk.bf16.vlgmr.msra.gmra.mrb[0].mxu0 %vm61_vm0, %v32_v9 }
 0x103   :  { %v111_v14 = vpop.f32.mrb[0].mxu0 }
 0x104   :  { %v119_v15 = vmul.f32 %v118_v12, %v111_v14  ;;  %v164_v16 = vpop.f32.mrb[1].mxu0 }
 0x105   :  { %v114_v17 = vpop.f32.mrb[2].mxu0 }
 0x106   :  { %v124_v18 = vadd.f32 %v123_v13, %v119_v15  ;;  %v165_v19 = vpop.f32.mrb[3].mxu0 }
 0x108   :  { %174 = vtanh.f32 %v124_v18 }
 0x112   :  { %v175_v20 = vpop.eup %174 }
 0x113   :  { %127 = vst.msk [vmem:[#allocation5] sm:$0x1] %vm126_vm2, %v175_v20 }
 0x114   :  { %199 = shalt.err (!%p196_p9)
}
 0x115   :  { %s200_s10 = scalar_lea.hbm %s285_s4, 16 }
 0x116   :  { %p201_p10 = scmp.ne.s32.totalorder %s285_s4, %s200_s10  ;;  %p204_p11 = scmp.lt.u32.totalorder %s200_s10, %s285_s4 }
 0x118   :  { %p206_p12 = pnand %p204_p11, %p201_p10 }
 0x11a   :  { %209 = shalt.err (!%p206_p12)
}
 0x11b   :  { %137 = dma.vmem_to_hbm [thread:$0]  %s135_s2, 16, %s285_s4, [#allocation3]  }
 0x11c   :  { %212 = dma.done.wait [#allocation3], 16  }
 0x11d   :  { %213 = vsyncadd [#allocation3], 4294967280 }
 0x11e   :  { %141 = vsyncpa [#allocation3], 1 }
 0x11f   :  { %142 = vsyncpa [#allocation4], 1 }

</bundles_post_ra>
